<compile_context>
chip_gen: v6e
topology: v6e:2x2x1
jax: 0.10.0
libtpu: 0.0.40
codegen_flags: <defaults>
</compile_context>

<pallas_src>
import jax
import jax.numpy as jnp
from jax.experimental import pallas as pl
from jax.experimental.pallas import tpu as pltpu

# Per-output-channel means (post-flip), as in the PyTorch module.
_MEANS = (91.4953, 103.8827, 131.0912)


def _preprocess_kernel(x_ref, o_ref):
    # x_ref, o_ref: (C, rows, lanes) full-array blocks in VMEM.
    # Channel flip via static indices; cast + mean-subtract is the hot path.
    C = o_ref.shape[0]
    for c in range(C):  # static unroll (C is tiny, e.g. 3)
        v = x_ref[C - 1 - c].astype(jnp.float32)
        if c < len(_MEANS):
            v = v - jnp.float32(_MEANS[c])
        o_ref[c] = v


def _lane_dense_shape(H: int, W: int):
    """Pick a lane-dense (rows, lanes) factorization of H*W (lanes % 128 == 0)."""
    hw = H * W
    for lanes in (512, 256, 128):
        if hw % lanes == 0:
            return hw // lanes, lanes
    # Fallback: keep original spatial shape (block == full dims still compiles).
    return H, W


def preprocess_input(x: jax.Array) -> jax.Array:
    """Pallas implementation of PreprocessInput.forward.

    x: (C, H, W), any real dtype (uint8 / float32 / ...). Returns float32 (C, H, W).
    """
    C, H, W = x.shape
    rows, lanes = _lane_dense_shape(H, W)

    # Free reshape of a contiguous array to a lane-dense layout.
    x2 = x.reshape(C, rows, lanes)

    out = pl.pallas_call(
        _preprocess_kernel,
        out_shape=jax.ShapeDtypeStruct((C, rows, lanes), jnp.float32),
        grid=(1,),
        in_specs=[pl.BlockSpec((C, rows, lanes), lambda i: (0, 0, 0))],
        out_specs=pl.BlockSpec((C, rows, lanes), lambda i: (0, 0, 0)),
        compiler_params=pltpu.CompilerParams(
            dimension_semantics=("arbitrary",)
        ),
    )(x2)

    return out.reshape(C, H, W)


def _reference(x: jax.Array) -> jax.Array:
    """Pure-JAX reference matching the PyTorch forward exactly."""
    y = jnp.flip(x.astype(jnp.float32), axis=0)
    y = y.at[0].add(-91.4953).at[1].add(-103.8827).at[2].add(-131.0912)
    return y


if __name__ == "__main__":
    key = jax.random.PRNGKey(0)
    # Small spatial size consistent with the module (real use is (3, 224, 224)).
    C, H, W = 3, 16, 16

    # Native-dtype (uint8) image input — cast happens inside the kernel.
    x_u8 = jax.random.randint(key, (C, H, W), 0, 256, dtype=jnp.int32).astype(
        jnp.uint8
    )
    out_u8 = jax.block_until_ready(preprocess_input(x_u8))
    ref_u8 = _reference(x_u8)
    assert out_u8.shape == (C, H, W)
    assert out_u8.dtype == jnp.float32
    assert jnp.allclose(out_u8, ref_u8, atol=1e-5, rtol=1e-5), "uint8 mismatch"

    # Also verify the float32 path (module accepts float inputs too).
    x_f32 = jax.random.uniform(
        jax.random.PRNGKey(1), (C, H, W), dtype=jnp.float32, minval=0.0, maxval=255.0
    )
    out_f32 = jax.block_until_ready(preprocess_input(x_f32))
    ref_f32 = _reference(x_f32)
    assert jnp.allclose(out_f32, ref_f32, atol=1e-5, rtol=1e-5), "f32 mismatch"

    print("KERNEL_OK")
</pallas_src>

<mosaic_0001>
module attributes {stable_mosaic.version = 11 : i64} {
  func.func @_preprocess_kernel(%arg0: i32, %arg1: memref<3x1x256xi8, #tpu.memory_space<vmem>>, %arg2: memref<3x1x256xf32, #tpu.memory_space<vmem>>) attributes {dimension_semantics = [#tpu.dimension_semantics<arbitrary>], iteration_bounds = array<i64: 1>, scalar_prefetch = 0 : i64, scratch_operands = 0 : i64, tpu.core_type = #tpu.core_type<tc>, window_params = [{pipeline_mode = #tpu.pipeline_mode<synchronous>, transform_indices = @transform_0, window_bounds = array<i64: 3, 1, 256>}, {pipeline_mode = #tpu.pipeline_mode<synchronous>, transform_indices = @transform_1, window_bounds = array<i64: 3, 1, 256>}]} {
    %c2 = arith.constant 2 : index
    %c0 = arith.constant 0 : index
    %c0_0 = arith.constant 0 : index
    %0 = vector.load %arg1[%c2, %c0, %c0_0] : memref<3x1x256xi8, #tpu.memory_space<vmem>>, vector<1x1x256xi8>
    %1 = vector.shape_cast %0 : vector<1x1x256xi8> to vector<1x256xi8>
    %2 = arith.uitofp %1 : vector<1x256xi8> to vector<1x256xf32>
    %cst = arith.constant 9.149530e+01 : f32
    %3 = vector.broadcast %cst : f32 to vector<1x256xf32>
    %4 = arith.subf %2, %3 : vector<1x256xf32>
    %c0_1 = arith.constant 0 : index
    %c0_2 = arith.constant 0 : index
    %c0_3 = arith.constant 0 : index
    %5 = vector.load %arg2[%c0_1, %c0_2, %c0_3] : memref<3x1x256xf32, #tpu.memory_space<vmem>>, vector<1x1x256xf32>
    %6 = vector.shape_cast %5 : vector<1x1x256xf32> to vector<1x256xf32>
    %7 = vector.shape_cast %4 : vector<1x256xf32> to vector<1x1x256xf32>
    tpu.vector_store %arg2[%c0_1, %c0_2, %c0_3], %7 {strides = array<i32>} : memref<3x1x256xf32, #tpu.memory_space<vmem>>, vector<1x1x256xf32>,
    %c1 = arith.constant 1 : index
    %c0_4 = arith.constant 0 : index
    %c0_5 = arith.constant 0 : index
    %8 = vector.load %arg1[%c1, %c0_4, %c0_5] : memref<3x1x256xi8, #tpu.memory_space<vmem>>, vector<1x1x256xi8>
    %9 = vector.shape_cast %8 : vector<1x1x256xi8> to vector<1x256xi8>
    %10 = arith.uitofp %9 : vector<1x256xi8> to vector<1x256xf32>
    %cst_6 = arith.constant 103.882698 : f32
    %11 = vector.broadcast %cst_6 : f32 to vector<1x256xf32>
    %12 = arith.subf %10, %11 : vector<1x256xf32>
    %c1_7 = arith.constant 1 : index
    %c0_8 = arith.constant 0 : index
    %c0_9 = arith.constant 0 : index
    %13 = vector.load %arg2[%c1_7, %c0_8, %c0_9] : memref<3x1x256xf32, #tpu.memory_space<vmem>>, vector<1x1x256xf32>
    %14 = vector.shape_cast %13 : vector<1x1x256xf32> to vector<1x256xf32>
    %15 = vector.shape_cast %12 : vector<1x256xf32> to vector<1x1x256xf32>
    tpu.vector_store %arg2[%c1_7, %c0_8, %c0_9], %15 {strides = array<i32>} : memref<3x1x256xf32, #tpu.memory_space<vmem>>, vector<1x1x256xf32>,
    %c0_10 = arith.constant 0 : index
    %c0_11 = arith.constant 0 : index
    %c0_12 = arith.constant 0 : index
    %16 = vector.load %arg1[%c0_10, %c0_11, %c0_12] : memref<3x1x256xi8, #tpu.memory_space<vmem>>, vector<1x1x256xi8>
    %17 = vector.shape_cast %16 : vector<1x1x256xi8> to vector<1x256xi8>
    %18 = arith.uitofp %17 : vector<1x256xi8> to vector<1x256xf32>
    %cst_13 = arith.constant 131.091202 : f32
    %19 = vector.broadcast %cst_13 : f32 to vector<1x256xf32>
    %20 = arith.subf %18, %19 : vector<1x256xf32>
    %c2_14 = arith.constant 2 : index
    %c0_15 = arith.constant 0 : index
    %c0_16 = arith.constant 0 : index
    %21 = vector.load %arg2[%c2_14, %c0_15, %c0_16] : memref<3x1x256xf32, #tpu.memory_space<vmem>>, vector<1x1x256xf32>
    %22 = vector.shape_cast %21 : vector<1x1x256xf32> to vector<1x256xf32>
    %23 = vector.shape_cast %20 : vector<1x256xf32> to vector<1x1x256xf32>
    tpu.vector_store %arg2[%c2_14, %c0_15, %c0_16], %23 {strides = array<i32>} : memref<3x1x256xf32, #tpu.memory_space<vmem>>, vector<1x1x256xf32>,
    return
  }
  func.func @transform_0(%arg0: i32) -> (i32, i32, i32) {
    %c0_i32 = arith.constant 0 : i32
    %c0_i32_0 = arith.constant 0 : i32
    %c0_i32_1 = arith.constant 0 : i32
    %c0_i32_2 = arith.constant 0 : i32
    return %c0_i32, %c0_i32_0, %c0_i32_1 : i32, i32, i32
  }
  func.func @transform_1(%arg0: i32) -> (i32, i32, i32) {
    %c0_i32 = arith.constant 0 : i32
    %c0_i32_0 = arith.constant 0 : i32
    %c0_i32_1 = arith.constant 0 : i32
    %c0_i32_2 = arith.constant 0 : i32
    return %c0_i32, %c0_i32_0, %c0_i32_1 : i32, i32, i32
  }
}

</mosaic_0001>

<bundles_post_ra>
// kernel: tpu_custom_call.1
= control target key start
LH: loop header
LB: loop body
LE: loop exit
PB: predicated region body
PF: predicated region fallthrough
CT: control target
= control target key end

     0   :  { %v19_v1 = vlaneseq  ;;  %v134_v4 = vmov 1966171168   ;;  %s157_s0 = inlined_call_operand.vmem [shape: u8[3,1,256], index: 0, kind: input, shape index: {}]   ;;  %s158_s1 = inlined_call_operand.hbm [shape: f32[3,1,256], index: 1, kind: output, shape index: {}]  }
   0x1   :  { %v99_v0 = vld [vmem:[%s157_s0 + $0x4] sm:$0x3]  ;;  %v105_v2 = vld [vmem:[%s157_s0] sm:$0xf]   ;;  %v17_v5 = vunpack.c.l.s4 %v134_v4 }
   0x2   :  { %v11_v3 = vunpack.c.0.s8 %v99_v0  ;;  %v107_v6 = vunpack.c.1.s8 %v105_v2  ;;  %v106_v7 = vunpack.c.0.s8 %v105_v2 }
   0x3   :  { %6 = vsyncpa [#allocation3], 0  ;;  %v20_v8 = vshrl.u32 %v19_v1, 7  ;;  %v18_v10 = vunpack.c.0.s8 %v17_v5  ;;  %s135_s10 = smov [#allocation2]   ;;  %vm33_vm0 = vcmp.lt.s32.totalorder %v19_v1, 256 }
   0x4   :  { %v12_v9 = vand.u32 255, %v11_v3  ;;  %v39_v11 = vand.u32 255, %v107_v6  ;;  %v62_v12 = vand.u32 255, %v106_v7  ;;  %s88_s0 = sshll.u32 %s135_s10, 4  ;;  %s89_s0 = int_to_ptr.vmem [resolvable:$true] %s88_s0 }
   0x5   :  { %v21_v14 = vsub.s32 %v18_v10, %v20_v8  ;;  %s112_s11 = scalar_lea.vmem %s89_s0, 96  ;;  %p117_p1 = scmp.lt.s32.totalorder %s89_s0, %s89_s0 }
   0x6   :  { %v13_v13 = vcvt.s32.f32 %v12_v9  ;;  %v40_v15 = vcvt.s32.f32 %v39_v11  ;;  %v63_v16 = vcvt.s32.f32 %v62_v12  ;;  %p113_p0 = scmp.ne.s32.totalorder %s89_s0, %s112_s11  ;;  %p118_p2 = scmp.lt.s32.totalorder %s112_s11, %s112_s11 }
   0x8   :  { %v100_v17 = vadd.f32 -91.4953, %v13_v13  ;;  %v102_v18 = vadd.f32 -103.8827, %v40_v15  ;;  %v103_v19 = vadd.f32 -131.0912, %v63_v16  ;;  %p119_p3 = por %p118_p2, %p117_p1 }
   0xa   :  { %v22_v20 = vrot.slane %v100_v17, %v21_v14  ;;  %v49_v21 = vrot.slane %v102_v18, %v21_v14  ;;  %v72_v22 = vrot.slane %v103_v19, %v21_v14  ;;  %p120_p4 = pnand %p119_p3, %p113_p0 }
   0xc   :  { %v29_v23 = vrot.slane %v22_v20, %v21_v14  ;;  %v56_v24 = vrot.slane %v49_v21, %v21_v14  ;;  %v79_v25 = vrot.slane %v72_v22, %v21_v14 }
   0xe   :  { %35 = vst.msk [vmem:[#allocation2] sm:$0x3] %vm33_vm0, %v29_v23  ;;  %59 = vst.msk [vmem:[#allocation2 + $0x2] sm:$0x3] %vm33_vm0, %v56_v24 }
   0xf   :  { %82 = vst.msk [vmem:[#allocation2 + $0x4] sm:$0x3] %vm33_vm0, %v79_v25 }
  0x10   :  { %123 = shalt.err (!%p120_p4)
}
  0x11   :  { %s136_s12 = smov 32   ;;  %s137_s13 = smov 2  }
  0x12   :  { %94 = dma.vmem_to_hbm [thread:$0]  %s89_s0, 96, %s158_s1, [#allocation3], %s136_s12, %s136_s12, %s137_s13  }
  0x13   :  { %132 = dma.done.wait [#allocation3], 96  }
  0x14   :  { %133 = vsyncadd [#allocation3], 4294967200 }
  0x15   :  { %98 = vsyncpa [#allocation3], 1 }

</bundles_post_ra>
